<compile_context>
chip_gen: v6e
topology: v6e:2x2x1
jax: 0.10.0
libtpu: 0.0.40
codegen_flags: <defaults>
</compile_context>

<pallas_src>
import functools

import jax
import jax.numpy as jnp
from jax.experimental import pallas as pl
from jax.experimental.pallas import tpu as pltpu


def _round_up(v, m):
    return ((v + m - 1) // m) * m


def _gsp2_kernel(x_ref, w0_ref, w1s_ref, w2_ref, o_ref, *, compute_dtype):
    # x: (TM, 784) native dtype  w0: (784, 20)  w1s = sigmoid(W1): (20, 20)
    # w2: (20, 10)  out: (TM, 10) f32
    # Cast in-kernel (VPU) instead of materialising an f32 copy in HBM.
    x = x_ref[...].astype(compute_dtype)

    # layer 0: relu(x @ W0)            (f32 accumulation on the MXU)
    h0 = jnp.dot(x, w0_ref[...], preferred_element_type=jnp.float32)
    h0 = jnp.maximum(h0, 0.0)

    # layer 1 (i in prunning_act_set, threshold=False): relu(h0 @ sigmoid(W1))
    h1 = jnp.dot(h0.astype(compute_dtype), w1s_ref[...],
                 preferred_element_type=jnp.float32)
    h1 = jnp.maximum(h1, 0.0)

    # output layer: h1 @ W2 (no activation)
    o_ref[...] = jnp.dot(h1.astype(compute_dtype), w2_ref[...],
                         preferred_element_type=jnp.float32)


def _device_kind():
    try:
        return jax.devices()[0].device_kind.lower()
    except Exception:
        return ""


def gsp2_forward(x_nchw, w0, w1, w2, *, tm=None, compute_dtype=jnp.float32):
    """Forward pass of gsp2 (prunning_set=None, threshold=False)."""
    n, c, h, w = x_nchw.shape
    # glue: flatten like torch's x.view(-1, H*W); keep the NATIVE dtype in HBM.
    x2d = x_nchw.reshape(n * c, h * w)
    m, k = x2d.shape
    n_out = w2.shape[1]

    # Weights are tiny (< 100 KB): cast once in the wrapper to the operand
    # dtype, and hoist the sigmoid out of the gridded kernel.
    w0c = w0.astype(compute_dtype)
    w1s = jax.nn.sigmoid(w1.astype(jnp.float32)).astype(compute_dtype)
    w2c = w2.astype(compute_dtype)

    kind = _device_kind()
    is_v5e = "v5" in kind
    is_v7 = "7" in kind

    if tm is None:
        # v5e: 1024 keeps the double-buffered input under the 16 MiB scoped
        # default and per-step overhead is already <2% of the ~4us tile DMA.
        # v6e/v7x: 2048 amortises the ~0.35us per-step overhead better.
        tm = 1024 if (is_v5e or not kind) else 2048

    # Row-tile: multiple of 8 (sublane), never larger than needed.
    tm_eff = min(tm, max(8, _round_up(m, 8)))
    if is_v7 and m > 8:
        # Keep grid >= 2 so the "parallel" row axis splits across both v7x TCs.
        tm_eff = min(tm_eff, max(8, _round_up(pl.cdiv(m, 2), 8)))
    grid = (pl.cdiv(m, tm_eff),)

    # Explicit scoped-VMEM budget: 2x (double-buffered) lane-padded input tile
    # + output tile + weight copies, with headroom; capped below v7x's 64 MiB.
    k_pad = _round_up(k, 128)
    need = (2 * tm_eff * k_pad * x2d.dtype.itemsize
            + 2 * tm_eff * _round_up(n_out, 128) * 4
            + 4 * k_pad * 128 * 4
            + (8 << 20))
    vmem_limit = int(min(48 << 20, max(24 << 20, need)))

    flops = 2 * m * (k * w0.shape[1]
                     + w1.shape[0] * w1.shape[1]
                     + w2.shape[0] * w2.shape[1])
    bytes_accessed = int(m * k * x2d.dtype.itemsize + m * n_out * 4
                         + (w0.size + w1.size + w2.size)
                         * jnp.dtype(compute_dtype).itemsize)

    kernel = functools.partial(_gsp2_kernel, compute_dtype=compute_dtype)

    out = pl.pallas_call(
        kernel,
        out_shape=jax.ShapeDtypeStruct((m, n_out), jnp.float32),
        grid_spec=pltpu.PrefetchScalarGridSpec(
            num_scalar_prefetch=0,
            grid=grid,
            in_specs=[
                # activation tile: marches down the rows (double-buffered)
                pl.BlockSpec((tm_eff, k), lambda i: (i, 0)),
                # weights: constant block index -> VMEM-resident, no re-DMA
                pl.BlockSpec(w0c.shape, lambda i: (0, 0)),
                pl.BlockSpec(w1s.shape, lambda i: (0, 0)),
                pl.BlockSpec(w2c.shape, lambda i: (0, 0)),
            ],
            out_specs=pl.BlockSpec((tm_eff, n_out), lambda i: (i, 0)),
        ),
        compiler_params=pltpu.CompilerParams(
            dimension_semantics=("parallel",),
            vmem_limit_bytes=vmem_limit,
        ),
        cost_estimate=pl.CostEstimate(
            flops=flops, transcendentals=0, bytes_accessed=bytes_accessed),
    )(x2d, w0c, w1s, w2c)
    return out


def init_params(key):
    # matches: torch.randn(in, out).normal_(mean=0, std=0.01) for each layer
    in_out_list = [[784, 20], [20, 20], [20, 10]]
    params = []
    for shape in in_out_list:
        key, sub = jax.random.split(key)
        params.append(
            jax.random.normal(sub, tuple(shape), dtype=jnp.float32) * 0.01)
    return params


def _reference(x_nchw, w0, w1, w2):
    hi = jax.lax.Precision.HIGHEST
    xr = x_nchw.reshape(-1, x_nchw.shape[2] * x_nchw.shape[3]).astype(jnp.float32)
    h = jnp.maximum(jnp.dot(xr, w0.astype(jnp.float32), precision=hi), 0.0)
    h = jnp.maximum(
        jnp.dot(h, jax.nn.sigmoid(w1.astype(jnp.float32)), precision=hi), 0.0)
    return jnp.dot(h, w2.astype(jnp.float32), precision=hi)


if __name__ == "__main__":
    key = jax.random.PRNGKey(0)
    kx, kx2, kp = jax.random.split(key, 3)

    # H*W must equal 784 to match the fixed 784x20 first-layer weight.
    w0, w1, w2 = init_params(kp)

    # test 1: tiny batch (single, ragged tile), f32 path
    x_small = jax.random.normal(kx, (2, 1, 28, 28), dtype=jnp.float32)
    out_small = gsp2_forward(x_small, w0, w1, w2)
    jax.block_until_ready(out_small)
    ref_small = _reference(x_small, w0, w1, w2)
    assert out_small.shape == (2, 10)
    assert jnp.allclose(out_small, ref_small, atol=2e-3, rtol=2e-3)

    # test 2: multi-step tiled grid (incl. ragged last tile), f32 path
    x_multi = jax.random.normal(kx2, (40, 1, 28, 28), dtype=jnp.float32)
    out_multi = gsp2_forward(x_multi, w0, w1, w2, tm=16)
    jax.block_until_ready(out_multi)
    ref_multi = _reference(x_multi, w0, w1, w2)
    assert out_multi.shape == (40, 10)
    assert jnp.allclose(out_multi, ref_multi, atol=2e-3, rtol=2e-3)

    # test 3: bf16 HBM storage + bf16 matmul operands (f32 accumulation)
    x_bf16 = x_multi.astype(jnp.bfloat16)
    out_bf16 = gsp2_forward(x_bf16, w0, w1, w2, tm=16,
                            compute_dtype=jnp.bfloat16)
    jax.block_until_ready(out_bf16)
    ref_bf16 = _reference(x_bf16, w0, w1, w2)
    assert out_bf16.shape == (40, 10)
    assert jnp.allclose(out_bf16, ref_bf16, atol=3e-2, rtol=3e-2)

    print("KERNEL_OK")
</pallas_src>

<mosaic_0001>
module attributes {stable_mosaic.version = 11 : i64} {
  func.func @_gsp2_kernel(%arg0: i32, %arg1: memref<8x784xf32, #tpu.memory_space<vmem>>, %arg2: memref<784x20xf32, #tpu.memory_space<vmem>>, %arg3: memref<20x20xf32, #tpu.memory_space<vmem>>, %arg4: memref<20x10xf32, #tpu.memory_space<vmem>>, %arg5: memref<8x10xf32, #tpu.memory_space<vmem>>) attributes {dimension_semantics = [#tpu.dimension_semantics<parallel>], iteration_bounds = array<i64: 1>, scalar_prefetch = 0 : i64, scratch_operands = 0 : i64, tpu.core_type = #tpu.core_type<tc>, window_params = [{transform_indices = @transform_0, window_bounds = array<i64: 8, 784>}, {pipeline_mode = #tpu.pipeline_mode<synchronous>, transform_indices = @transform_1, window_bounds = array<i64: 784, 20>}, {pipeline_mode = #tpu.pipeline_mode<synchronous>, transform_indices = @transform_2, window_bounds = array<i64: 20, 20>}, {pipeline_mode = #tpu.pipeline_mode<synchronous>, transform_indices = @transform_3, window_bounds = array<i64: 20, 10>}, {transform_indices = @transform_4, window_bounds = array<i64: 8, 10>}]} {
    %c0 = arith.constant 0 : index
    %c0_0 = arith.constant 0 : index
    %0 = vector.load %arg1[%c0, %c0_0] : memref<8x784xf32, #tpu.memory_space<vmem>>, vector<8x784xf32>
    %c0_1 = arith.constant 0 : index
    %c0_2 = arith.constant 0 : index
    %1 = vector.load %arg2[%c0_1, %c0_2] : memref<784x20xf32, #tpu.memory_space<vmem>>, vector<784x20xf32>
    %cst = arith.constant dense<0.000000e+00> : vector<8x20xf32>
    %2 = tpu.matmul %0, %1, %cst {dimension_numbers = #tpu.dot_dimension_numbers<[1], [0], [0], [1], [0, 0, 1, 1], [], []>} : vector<8x784xf32>, vector<784x20xf32>, vector<8x20xf32> -> vector<8x20xf32>
    %cst_3 = arith.constant 0.000000e+00 : f32
    %3 = vector.broadcast %cst_3 : f32 to vector<8x20xf32>
    %4 = arith.maximumf %2, %3 : vector<8x20xf32>
    %c0_4 = arith.constant 0 : index
    %c0_5 = arith.constant 0 : index
    %5 = vector.load %arg3[%c0_4, %c0_5] : memref<20x20xf32, #tpu.memory_space<vmem>>, vector<20x20xf32>
    %cst_6 = arith.constant dense<0.000000e+00> : vector<8x20xf32>
    %6 = tpu.matmul %4, %5, %cst_6 {dimension_numbers = #tpu.dot_dimension_numbers<[1], [0], [0], [1], [0, 0, 1, 1], [], []>} : vector<8x20xf32>, vector<20x20xf32>, vector<8x20xf32> -> vector<8x20xf32>
    %cst_7 = arith.constant 0.000000e+00 : f32
    %7 = vector.broadcast %cst_7 : f32 to vector<8x20xf32>
    %8 = arith.maximumf %6, %7 : vector<8x20xf32>
    %c0_8 = arith.constant 0 : index
    %c0_9 = arith.constant 0 : index
    %9 = vector.load %arg4[%c0_8, %c0_9] : memref<20x10xf32, #tpu.memory_space<vmem>>, vector<20x10xf32>
    %cst_10 = arith.constant dense<0.000000e+00> : vector<8x10xf32>
    %10 = tpu.matmul %8, %9, %cst_10 {dimension_numbers = #tpu.dot_dimension_numbers<[1], [0], [0], [1], [0, 0, 1, 1], [], []>} : vector<8x20xf32>, vector<20x10xf32>, vector<8x10xf32> -> vector<8x10xf32>
    %c0_11 = arith.constant 0 : index
    %c0_12 = arith.constant 0 : index
    %11 = vector.load %arg5[%c0_11, %c0_12] : memref<8x10xf32, #tpu.memory_space<vmem>>, vector<8x10xf32>
    tpu.vector_store %arg5[%c0_11, %c0_12], %10 {strides = array<i32>} : memref<8x10xf32, #tpu.memory_space<vmem>>, vector<8x10xf32>,
    return
  }
  func.func @transform_0(%arg0: i32) -> (i32, i32) {
    %c0_i32 = arith.constant 0 : i32
    %c0_i32_0 = arith.constant 0 : i32
    return %arg0, %c0_i32 : i32, i32
  }
  func.func @transform_1(%arg0: i32) -> (i32, i32) {
    %c0_i32 = arith.constant 0 : i32
    %c0_i32_0 = arith.constant 0 : i32
    %c0_i32_1 = arith.constant 0 : i32
    return %c0_i32, %c0_i32_0 : i32, i32
  }
  func.func @transform_2(%arg0: i32) -> (i32, i32) {
    %c0_i32 = arith.constant 0 : i32
    %c0_i32_0 = arith.constant 0 : i32
    %c0_i32_1 = arith.constant 0 : i32
    return %c0_i32, %c0_i32_0 : i32, i32
  }
  func.func @transform_3(%arg0: i32) -> (i32, i32) {
    %c0_i32 = arith.constant 0 : i32
    %c0_i32_0 = arith.constant 0 : i32
    %c0_i32_1 = arith.constant 0 : i32
    return %c0_i32, %c0_i32_0 : i32, i32
  }
  func.func @transform_4(%arg0: i32) -> (i32, i32) {
    %c0_i32 = arith.constant 0 : i32
    %c0_i32_0 = arith.constant 0 : i32
    return %arg0, %c0_i32 : i32, i32
  }
}

</mosaic_0001>

<bundles_post_ra>
// kernel: tpu_custom_call.1
= control target key start
LH: loop header
LB: loop body
LE: loop exit
PB: predicated region body
PF: predicated region fallthrough
CT: control target
= control target key end

     0   :  { %9 = vsyncpa [#allocation3], 0  ;;  %v858_v30 = vmov 1983009808   ;;  %v139_v32 = vlaneseq  ;;  %vm860_vm0 = vmmov 0   ;;  %vm209_vm1 = vcmask 130048   ;;  %s1262_s0 = inlined_call_operand.vmem [shape: f32[2,784], index: 0, kind: input, shape index: {}]   ;;  %s1263_s1 = inlined_call_operand.vmem [shape: f32[784,20], index: 1, kind: input, shape index: {}]   ;;  %s1264_s2 = inlined_call_operand.vmem [shape: f32[20,20], index: 2, kind: input, shape index: {}]   ;;  %s1265_s3 = inlined_call_operand.vmem [shape: f32[20,10], index: 3, kind: input, shape index: {}]   ;;  %s1266_s4 = inlined_call_operand.hbm [shape: f32[2,10], index: 4, kind: output, shape index: {}]  }
   0x1   :  { %v57_v0 = vld [vmem:[%s1263_s1 + $0xf8] sm:$0xff]  ;;  %v56_v4 = vld [vmem:[%s1263_s1 + $0xf0] sm:$0xff]  ;;  %v55_v8 = vld [vmem:[%s1263_s1 + $0xe8] sm:$0xff]  ;;  %v137_v31 = vunpack.c.l.s4 %v858_v30  ;;  %vm500_vm2 = vcmask 1043456   ;;  %vm496_vm3 = vcmask 162816   ;;  %vm654_vm4 = vcmask 80896  }
   0x2   :  { %v89_v1 = vld [vmem:[%s1263_s1 + $0x1f8] sm:$0xff]  ;;  %677 = vmatprep.subr.mxu0 %v57_v0  ;;  %v88_v5 = vld [vmem:[%s1263_s1 + $0x1f0] sm:$0xff]  ;;  %v87_v9 = vld [vmem:[%s1263_s1 + $0x1e8] sm:$0xff]  ;;  %v140_v42 = vshrl.u32 %v139_v32, 7 }
   0x3   :  { %712 = vmatprep.subr.mxu1 %v89_v1  ;;  %v41_v2 = vld [vmem:[%s1263_s1 + $0x78] sm:$0xff]  ;;  %v40_v6 = vld [vmem:[%s1263_s1 + $0x70] sm:$0xff]  ;;  %v39_v10 = vld [vmem:[%s1263_s1 + $0x68] sm:$0xff]  ;;  %v138_v41 = vunpack.c.0.s8 %v137_v31 }
   0x4   :  { %v73_v3 = vld [vmem:[%s1263_s1 + $0x178] sm:$0xff]  ;;  %678 = vmatpush3.msra.mxu0 %v41_v2  ;;  %v72_v7 = vld [vmem:[%s1263_s1 + $0x170] sm:$0xff]  ;;  %v71_v11 = vld [vmem:[%s1263_s1 + $0x168] sm:$0xff] }
   0x5   :  { %713 = vmatpush3.msra.mxu1 %v73_v3  ;;  %679 = vmatprep.subr.mxu0 %v56_v4  ;;  %v54_v12 = vld [vmem:[%s1263_s1 + $0xe0] sm:$0xff]  ;;  %v53_v16 = vld [vmem:[%s1263_s1 + $0xd8] sm:$0xff]  ;;  %v52_v20 = vld [vmem:[%s1263_s1 + $0xd0] sm:$0xff]  ;;  %v1039_v55 = vsub.s32 %v138_v41, %v140_v42 }
   0x6   :  { %714 = vmatprep.subr.mxu1 %v88_v5  ;;  %680 = vmatpush3.msra.mxu0 %v40_v6  ;;  %v86_v13 = vld [vmem:[%s1263_s1 + $0x1e0] sm:$0xff]  ;;  %v85_v17 = vld [vmem:[%s1263_s1 + $0x1d8] sm:$0xff]  ;;  %v84_v21 = vld [vmem:[%s1263_s1 + $0x1d0] sm:$0xff] }
   0x7   :  { %715 = vmatpush3.msra.mxu1 %v72_v7  ;;  %681 = vmatprep.subr.mxu0 %v55_v8  ;;  %v38_v14 = vld [vmem:[%s1263_s1 + $0x60] sm:$0xff]  ;;  %v37_v18 = vld [vmem:[%s1263_s1 + $0x58] sm:$0xff]  ;;  %v36_v22 = vld [vmem:[%s1263_s1 + $0x50] sm:$0xff] }
   0x8   :  { %716 = vmatprep.subr.mxu1 %v87_v9  ;;  %v70_v15 = vld [vmem:[%s1263_s1 + $0x160] sm:$0xff]  ;;  %682 = vmatpush3.msra.mxu0 %v39_v10  ;;  %v69_v19 = vld [vmem:[%s1263_s1 + $0x158] sm:$0xff]  ;;  %v68_v23 = vld [vmem:[%s1263_s1 + $0x150] sm:$0xff] }
   0x9   :  { %717 = vmatpush3.msra.mxu1 %v71_v11  ;;  %683 = vmatprep.subr.mxu0 %v54_v12  ;;  %v51_v24 = vld [vmem:[%s1263_s1 + $0xc8] sm:$0xff]  ;;  %v50_v28 = vld [vmem:[%s1263_s1 + $0xc0] sm:$0xff]  ;;  %v49_v35 = vld [vmem:[%s1263_s1 + $0xb8] sm:$0xff] }
   0xa   :  { %718 = vmatprep.subr.mxu1 %v86_v13  ;;  %684 = vmatpush3.msra.mxu0 %v38_v14  ;;  %v83_v25 = vld [vmem:[%s1263_s1 + $0x1c8] sm:$0xff]  ;;  %v82_v29 = vld [vmem:[%s1263_s1 + $0x1c0] sm:$0xff]  ;;  %v81_v36 = vld [vmem:[%s1263_s1 + $0x1b8] sm:$0xff] }
   0xb   :  { %719 = vmatpush3.msra.mxu1 %v70_v15  ;;  %685 = vmatprep.subr.mxu0 %v53_v16  ;;  %v35_v26 = vld [vmem:[%s1263_s1 + $0x48] sm:$0xff]  ;;  %v34_v33 = vld [vmem:[%s1263_s1 + $0x40] sm:$0xff]  ;;  %v33_v37 = vld [vmem:[%s1263_s1 + $0x38] sm:$0xff] }
   0xc   :  { %720 = vmatprep.subr.mxu1 %v85_v17  ;;  %686 = vmatpush3.msra.mxu0 %v37_v18  ;;  %v67_v27 = vld [vmem:[%s1263_s1 + $0x148] sm:$0xff]  ;;  %v66_v34 = vld [vmem:[%s1263_s1 + $0x140] sm:$0xff]  ;;  %v65_v38 = vld [vmem:[%s1263_s1 + $0x138] sm:$0xff] }
   0xd   :  { %721 = vmatpush3.msra.mxu1 %v69_v19  ;;  %687 = vmatprep.subr.mxu0 %v52_v20  ;;  %v48_v39 = vld [vmem:[%s1263_s1 + $0xb0] sm:$0xff]  ;;  %v47_v45 = vld [vmem:[%s1263_s1 + $0xa8] sm:$0xff]  ;;  %v46_v49 = vld [vmem:[%s1263_s1 + $0xa0] sm:$0xff] }
   0xe   :  { %722 = vmatprep.subr.mxu1 %v84_v21  ;;  %688 = vmatpush3.msra.mxu0 %v36_v22  ;;  %v80_v40 = vld [vmem:[%s1263_s1 + $0x1b0] sm:$0xff]  ;;  %v79_v46 = vld [vmem:[%s1263_s1 + $0x1a8] sm:$0xff]  ;;  %v78_v50 = vld [vmem:[%s1263_s1 + $0x1a0] sm:$0xff] }
   0xf   :  { %723 = vmatpush3.msra.mxu1 %v68_v23  ;;  %689 = vmatprep.subr.mxu0 %v51_v24  ;;  %v32_v43 = vld [vmem:[%s1263_s1 + $0x30] sm:$0xff]  ;;  %v31_v47 = vld [vmem:[%s1263_s1 + $0x28] sm:$0xff]  ;;  %v30_v51 = vld [vmem:[%s1263_s1 + $0x20] sm:$0xff]  ;;  %v859_v24 = vmov 0.0  }
  0x10   :  { %724 = vmatprep.subr.mxu1 %v83_v25  ;;  %690 = vmatpush3.msra.mxu0 %v35_v26  ;;  %v64_v44 = vld [vmem:[%s1263_s1 + $0x130] sm:$0xff]  ;;  %v63_v48 = vld [vmem:[%s1263_s1 + $0x128] sm:$0xff]  ;;  %v62_v52 = vld [vmem:[%s1263_s1 + $0x120] sm:$0xff] }
  0x11   :  { %725 = vmatpush3.msra.mxu1 %v67_v27  ;;  %691 = vmatprep.subr.mxu0 %v50_v28  ;;  %v45_v53 = vld [vmem:[%s1263_s1 + $0x98] sm:$0xff]  ;;  %v824_v57 = vld [vmem:[%s1262_s0] ss:$14 sps:$4 sm:$0xff]   ;;  %v828_v60 = vld [vmem:[%s1262_s0 + $0x4] ss:$14 sps:$4 sm:$0xff]  }
  0x12   :  { %726 = vmatprep.subr.mxu1 %v82_v29  ;;  %692 = vmatpush3.msra.mxu0 %v34_v33  ;;  %v77_v54 = vld [vmem:[%s1263_s1 + $0x198] sm:$0xff]  ;;  %v44_v61 = vld [vmem:[%s1263_s1 + $0x90] sm:$0xff]  ;;  %v142_v63 = vrot.slane %v824_v57, %v1039_v55  ;;  %v149_v4 = vrot.slane %v828_v60, %v1039_v55  ;;  %v43_v5 = vld [vmem:[%s1263_s1 + $0x88] sm:$0xff] }
  0x13   :  { %727 = vmatpush3.msra.mxu1 %v66_v34  ;;  %693 = vmatprep.subr.mxu0 %v49_v35  ;;  %v29_v56 = vld [vmem:[%s1263_s1 + $0x18] sm:$0xff]  ;;  %v76_v62 = vld [vmem:[%s1263_s1 + $0x190] sm:$0xff]  ;;  %v75_v6 = vld [vmem:[%s1263_s1 + $0x188] sm:$0xff] }
  0x14   :  { %728 = vmatprep.subr.mxu1 %v81_v36  ;;  %694 = vmatpush3.msra.mxu0 %v33_v37  ;;  %v61_v58 = vld [vmem:[%s1263_s1 + $0x118] sm:$0xff]  ;;  %v829_v0 = vld [vmem:[%s1262_s0 + $0x20] ss:$14 sps:$4 sm:$0xff]   ;;  %v833_v26 = vld [vmem:[%s1262_s0 + $0x24] ss:$14 sps:$4 sm:$0xff]  }
  0x15   :  { %729 = vmatpush3.msra.mxu1 %v65_v38  ;;  %695 = vmatprep.subr.mxu0 %v48_v39  ;;  %v826_v59 = vld [vmem:[%s1262_s0 + $0x1c] ss:$14 sps:$4 sm:$0xff]   ;;  %v28_v1 = vld [vmem:[%s1263_s1 + $0x10] sm:$0xff]  ;;  %v163_v7 = vrot.slane %v829_v0, %v1039_v55  ;;  %v42_v10 = vld [vmem:[%s1263_s1 + $0x80] sm:$0xff]  ;;  %v1139_v31 = vrot.slane %v833_v26, %v1039_v55 }
  0x16   :  { %730 = vmatprep.subr.mxu1 %v80_v40  ;;  %696 = vmatpush3.msra.mxu0 %v32_v43  ;;  %v60_v2 = vld [vmem:[%s1263_s1 + $0x110] sm:$0xff]  ;;  %v156_v3 = vrot.slane %v826_v59, %v1039_v55  ;;  %v27_v8 = vld [vmem:[%s1263_s1 + $0x8] sm:$0xff]  ;;  %v74_v11 = vld [vmem:[%s1263_s1 + $0x180] sm:$0xff] }
  0x17   :  { %731 = vmatpush3.msra.mxu1 %v64_v44  ;;  %697 = vmatprep.subr.mxu0 %v47_v45  ;;  %v59_v9 = vld [vmem:[%s1263_s1 + $0x108] sm:$0xff]  ;;  %v26_v13 = vld [vmem:[%s1263_s1] sm:$0xff]  ;;  %v167_v14 = vcombine.high %v149_v4, %v163_v7  ;;  %v166_v17 = vcombine.low %v149_v4, %v163_v7  ;;  %v121_v18 = vld [vmem:[%s1263_s1 + $0x2f8] sm:$0xff] }
  0x18   :  { %732 = vmatprep.subr.mxu1 %v79_v46  ;;  %698 = vmatpush3.msra.mxu0 %v31_v47  ;;  %v165_v12 = vcombine.high %v142_v63, %v156_v3  ;;  %v58_v15 = vld [vmem:[%s1263_s1 + $0x100] sm:$0xff]  ;;  %v164_v16 = vcombine.low %v142_v63, %v156_v3  ;;  %v105_v19 = vld [vmem:[%s1263_s1 + $0x278] sm:$0xff]  ;;  %v120_v20 = vld [vmem:[%s1263_s1 + $0x2f0] sm:$0xff] }
  0x19   :  { %733 = vmatpush3.msra.mxu1 %v63_v48  ;;  %699 = vmatprep.subr.mxu0 %v46_v49  ;;  %v104_v21 = vld [vmem:[%s1263_s1 + $0x270] sm:$0xff]  ;;  %v119_v22 = vld [vmem:[%s1263_s1 + $0x2e8] sm:$0xff]  ;;  %v118_v29 = vld [vmem:[%s1263_s1 + $0x2e0] sm:$0xff] }
  0x1a   :  { %734 = vmatprep.subr.mxu1 %v78_v50  ;;  %700 = vmatpush3.msra.mxu0 %v30_v51  ;;  %v103_v23 = vld [vmem:[%s1263_s1 + $0x268] sm:$0xff]  ;;  %v122_v33 = vld [vmem:[%s1263_s1 + $0x300] sm:$0xff]  ;;  %v117_v37 = vld [vmem:[%s1263_s1 + $0x2d8] sm:$0xff] }
  0x1b   :  { %735 = vmatpush3.msra.mxu1 %v62_v52  ;;  %701 = vmatprep.subr.mxu0 %v45_v53  ;;  %v830_v25 = vld [vmem:[%s1262_s0 + $0x8] ss:$14 sps:$4 sm:$0xff]   ;;  %v832_v27 = vld [vmem:[%s1262_s0 + $0xc] ss:$14 sps:$4 sm:$0x33]   ;;  %v102_v34 = vld [vmem:[%s1263_s1 + $0x260] sm:$0xff] }
  0x1c   :  { %736 = vmatprep.subr.mxu1 %v77_v54  ;;  %702 = vmatpush3.msra.mxu0 %v29_v56  ;;  %v835_v28 = vld [vmem:[%s1262_s0 + $0x28] ss:$14 sps:$4 sm:$0x33]   ;;  %v1136_v30 = vrot.slane %v830_v25, %v1039_v55  ;;  %v185_v35 = vrot.slane %v832_v27, %v1039_v55  ;;  %v101_v39 = vld [vmem:[%s1263_s1 + $0x258] sm:$0xff]  ;;  %v114_v45 = vld [vmem:[%s1263_s1 + $0x2c0] sm:$0xff] }
  0x1d   :  { %737 = vmatpush3.msra.mxu1 %v61_v58  ;;  %703 = vmatprep.subr.mxu0 %v44_v61  ;;  %v123_v32 = vld [vmem:[%s1263_s1 + $0x308] sm:$0xff]  ;;  %v199_v36 = vrot.slane %v835_v28, %v1039_v55  ;;  %v116_v41 = vld [vmem:[%s1263_s1 + $0x2d0] sm:$0xff]  ;;  %v98_v46 = vld [vmem:[%s1263_s1 + $0x240] sm:$0xff] }
  0x1e   :  { %738 = vmatprep.subr.mxu1 %v76_v62  ;;  %704 = vmatpush3.msra.mxu0 %v28_v1  ;;  %v201_v38 = vcombine.high %v1136_v30, %v1139_v31  ;;  %v100_v42 = vld [vmem:[%s1263_s1 + $0x250] sm:$0xff]  ;;  %v115_v43 = vld [vmem:[%s1263_s1 + $0x2c8] sm:$0xff]  ;;  %v113_v47 = vld [vmem:[%s1263_s1 + $0x2b8] sm:$0xff]  ;;  %v200_v63 = vcombine.low %v1136_v30, %v1139_v31 }
  0x1f   :  { %739 = vmatpush3.msra.mxu1 %v60_v2  ;;  %705 = vmatprep.subr.mxu0 %v43_v5  ;;  %v202_v40 = vcombine.low %v185_v35, %v199_v36  ;;  %v99_v44 = vld [vmem:[%s1263_s1 + $0x248] sm:$0xff]  ;;  %v97_v48 = vld [vmem:[%s1263_s1 + $0x238] sm:$0xff]  ;;  %v112_v49 = vld [vmem:[%s1263_s1 + $0x2b0] sm:$0xff] }
  0x20   :  { %740 = vmatprep.subr.mxu1 %v75_v6  ;;  %706 = vmatpush3.msra.mxu0 %v27_v8  ;;  %v96_v50 = vld [vmem:[%s1263_s1 + $0x230] sm:$0xff]  ;;  %v111_v51 = vld [vmem:[%s1263_s1 + $0x2a8] sm:$0xff]  ;;  %v110_v53 = vld [vmem:[%s1263_s1 + $0x2a0] sm:$0xff] }
  0x21   :  { %741 = vmatpush3.msra.mxu1 %v59_v9  ;;  %707 = vmatprep.subr.mxu0 %v42_v10  ;;  %v95_v52 = vld [vmem:[%s1263_s1 + $0x228] sm:$0xff]  ;;  %v94_v54 = vld [vmem:[%s1263_s1 + $0x220] sm:$0xff]  ;;  %v109_v55 = vld [vmem:[%s1263_s1 + $0x298] sm:$0xff] }
  0x22   :  { %742 = vmatprep.subr.mxu1 %v74_v11  ;;  %708 = vmatpush3.msra.mxu0 %v26_v13  ;;  %v93_v56 = vld [vmem:[%s1263_s1 + $0x218] sm:$0xff]  ;;  %v108_v57 = vld [vmem:[%s1263_s1 + $0x290] sm:$0xff]  ;;  %v107_v59 = vld [vmem:[%s1263_s1 + $0x288] sm:$0xff] }
  0x23   :  { %276 = vmatprep.mubr.f32.mxu0 %v165_v12  ;;  %743 = vmatpush3.msra.mxu1 %v58_v15  ;;  %v92_v58 = vld [vmem:[%s1263_s1 + $0x210] sm:$0xff]  ;;  %v91_v60 = vld [vmem:[%s1263_s1 + $0x208] sm:$0xff]  ;;  %v106_v61 = vld [vmem:[%s1263_s1 + $0x280] sm:$0xff] }
  0x24   :  { %346 = vmatprep.mubr.f32.mxu1 %v167_v14  ;;  %277 = vmatmul.mubr.f32.vlgmr.msra.gmra.mxu0 %v164_v16  ;;  %v90_v62 = vld [vmem:[%s1263_s1 + $0x200] sm:$0xff]  ;;  %v495_v0 = vld [vmem:[%s1264_s2 + $0x10] sm:$0xf]  ;;  %v494_v1 = vld [vmem:[%s1264_s2 + $0x8] sm:$0xff] }
  0x25   :  { %347 = vmatmul.mubr.f32.vlgmr.msra.gmra.mxu1 %v166_v17  ;;  %747 = vmatprep.subr.mxu0 %v121_v18  ;;  %v493_v2 = vld [vmem:[%s1264_s2] sm:$0xff]  ;;  %v577_v18 = vld [vmem:[%s1265_s3 + $0x10] sm:$0xf] }
  0x26   :  { %793 = vmatprep.subr.mxu1 %v859_v24  ;;  %748 = vmatpush3.msra.mxu0 %v105_v19  ;;  %v576_v19 = vld [vmem:[%s1265_s3 + $0x8] sm:$0xff] }
  0x27   :  { %797 = vmatprep.mubr.msk.f32.mxu1 %vm860_vm0, %v859_v24  ;;  %749 = vmatprep.subr.mxu0 %v120_v20  ;;  %v575_v20 = vld [vmem:[%s1265_s3] sm:$0xff] }
  0x28   :  { %750 = vmatpush3.msra.mxu0 %v104_v21  ;;  %794 = vmatpush3.msra.mxu1 %v123_v32 }
  0x29   :  { %751 = vmatprep.subr.mxu0 %v119_v22  ;;  %795 = vmatprep.subr.mxu1 %v859_v24 }
  0x2a   :  { %752 = vmatpush3.msra.mxu0 %v103_v23  ;;  %796 = vmatpush3.msra.mxu1 %v122_v33 }
  0x2b   :  { %753 = vmatprep.subr.mxu0 %v118_v29  ;;  %416 = vmatprep.mubr.f32.mxu0 %v201_v38 }
  0x2c   :  { %754 = vmatpush3.msra.mxu0 %v102_v34  ;;  %798 = vmatmul.mubr.msk.f32.vlgmr.msra.gmra.mxu1 %vm209_vm1, %v202_v40 }
  0x2d   :  { %755 = vmatprep.subr.mxu0 %v117_v37  ;;  %800 = vmatprep.subr.mxu1 %v859_v24 }
  0x2e   :  { %756 = vmatpush3.msra.mxu0 %v101_v39  ;;  %806 = vmatprep.mubr.msk.f32.mxu1 %vm860_vm0, %v859_v24 }
  0x2f   :  { %757 = vmatprep.subr.mxu0 %v116_v41  ;;  %801 = vmatpush3.msk.msra.mxu1 %vm500_vm2, %v495_v0 }
  0x30   :  { %758 = vmatpush3.msra.mxu0 %v100_v42  ;;  %802 = vmatprep.subr.mxu1 %v859_v24 }
  0x31   :  { %759 = vmatprep.subr.mxu0 %v115_v43  ;;  %803 = vmatpush3.msra.mxu1 %v494_v1 }
  0x32   :  { %760 = vmatpush3.msra.mxu0 %v99_v44  ;;  %804 = vmatprep.subr.mxu1 %v859_v24 }
  0x33   :  { %761 = vmatprep.subr.mxu0 %v114_v45  ;;  %805 = vmatpush3.msra.mxu1 %v493_v2 }
  0x34   :  { %762 = vmatpush3.msra.mxu0 %v98_v46  ;;  %809 = vmatprep.subr.mxu1 %v859_v24 }
  0x35   :  { %763 = vmatprep.subr.mxu0 %v113_v47 }
  0x36   :  { %764 = vmatpush3.msra.mxu0 %v97_v48 }
  0x37   :  { %765 = vmatprep.subr.mxu0 %v112_v49 }
  0x38   :  { %766 = vmatpush3.msra.mxu0 %v96_v50 }
  0x39   :  { %767 = vmatprep.subr.mxu0 %v111_v51 }
  0x3a   :  { %768 = vmatpush3.msra.mxu0 %v95_v52 }
  0x3b   :  { %769 = vmatprep.subr.mxu0 %v110_v53 }
  0x3c   :  { %770 = vmatpush3.msra.mxu0 %v94_v54 }
  0x3d   :  { %771 = vmatprep.subr.mxu0 %v109_v55 }
  0x3e   :  { %772 = vmatpush3.msra.mxu0 %v93_v56 }
  0x3f   :  { %773 = vmatprep.subr.mxu0 %v108_v57 }
  0x40   :  { %774 = vmatpush3.msra.mxu0 %v92_v58 }
  0x41   :  { %775 = vmatprep.subr.mxu0 %v107_v59 }
  0x42   :  { %776 = vmatpush3.msra.mxu0 %v91_v60 }
  0x43   :  { %777 = vmatprep.subr.mxu0 %v106_v61 }
  0x44   :  { %778 = vmatpush3.msra.mxu0 %v90_v62 }
  0x45   :  { %417 = vmatmul.mubr.f32.vlgmr.msra.gmra.mxu0 %v200_v63 }
  0xe4   :  { %v709_v7 = vpop.f32.mrf.mxu0 }
  0xe5   :  { %v744_v3 = vpop.f32.mrf.mxu1 }
  0xe6   :  { %v710_v8 = vpop.f32.mrf.mxu0 }
  0xe7   :  { %v745_v4 = vpop.f32.mrf.mxu1  ;;  %v711_v9 = vadd.f32 %v710_v8, %v709_v7 }
  0xe8   :  { %v746_v10 = vadd.f32 %v745_v4, %v744_v3 }
  0xea   :  { %v349_v13 = vadd.f32 %v746_v10, %v711_v9 }
  0xec   :  { %v488_v5 = vpop.f32.mrf.mxu1 }
  0xee   :  { %v799_v6 = vpop.f32.mrf.mxu1 }
 0x105   :  { %v779_v11 = vpop.f32.mrf.mxu0 }
 0x107   :  { %v780_v12 = vpop.f32.mrf.mxu0 }
 0x108   :  { %v781_v14 = vadd.f32 %v780_v12, %v779_v11 }
 0x10a   :  { %v419_v15 = vadd.f32 %v781_v14, %v349_v13 }
 0x10c   :  { %v489_v16 = vadd.f32 %v488_v5, %v419_v15 }
 0x10e   :  { %v492_v17 = vmax.f32 %v489_v16, 0.0 }
 0x110   :  { %807 = vmatmul.mubr.msk.f32.vlgmr.msra.gmra.mxu1 %vm496_vm3, %v492_v17 }
 0x111   :  { %810 = vmatpush3.msk.msra.mxu1 %vm500_vm2, %v577_v18  ;;  %815 = vmatprep.mubr.msk.f32.mxu1 %vm860_vm0, %v859_v24 }
 0x112   :  { %811 = vmatprep.subr.mxu1 %v859_v24 }
 0x113   :  { %812 = vmatpush3.msra.mxu1 %v576_v19 }
 0x114   :  { %813 = vmatprep.subr.mxu1 %v859_v24 }
 0x115   :  { %814 = vmatpush3.msra.mxu1 %v575_v20 }
 0x1d0   :  { %v570_v21 = vpop.f32.mrf.mxu1 }
 0x1d1   :  { %v574_v22 = vmax.f32 %v570_v21, 0.0 }
 0x1d2   :  { %v808_v23 = vpop.f32.mrf.mxu1 }
 0x1d3   :  { %816 = vmatmul.mubr.msk.f32.vlgmr.msra.gmra.mxu1 %vm496_vm3, %v574_v22 }
 0x293   :  { %v650_v25 = vpop.f32.mrf.mxu1 }
 0x294   :  { %655 = vst.msk [vmem:[#allocation2] sm:$0xff] %vm654_vm4, %v650_v25 }
 0x295   :  { %v817_v26 = vpop.f32.mrf.mxu1 }
 0x296   :  { %660 = vsyncadd [#allocation3], 96  ;;  %s861_s26 = smov [#allocation2]  }
 0x297   :  { %s661_s27 = sshll.u32 %s861_s26, 4  ;;  %s662_s27 = int_to_ptr.vmem [resolvable:$true] %s661_s27 }
 0x298   :  { %s836_s28 = scalar_lea.vmem %s662_s27, 32  ;;  %s840_s29 = scalar_lea.vmem %s662_s27, 128 }
 0x299   :  { %p837_p0 = scmp.ne.s32.totalorder %s662_s27, %s836_s28  ;;  %p841_p1 = scmp.lt.s32.totalorder %s662_s27, %s662_s27 }
 0x29a   :  { %p842_p2 = scmp.lt.s32.totalorder %s840_s29, %s836_s28 }
 0x29c   :  { %p843_p3 = por %p842_p2, %p841_p1 }
 0x29e   :  { %p844_p4 = pnand %p843_p3, %p837_p0 }
 0x2a0   :  { %847 = shalt.err (!%p844_p4)
}
 0x2a1   :  { %s862_s3 = smov 32   ;;  %s863_s30 = smov 2  }
 0x2a2   :  { %667 = dma.vmem_to_hbm [thread:$0]  %s662_s27, 32, %s1266_s4, [#allocation3], %s862_s3, %s862_s3, %s863_s30  }
 0x2a3   :  { %856 = dma.done.wait [#allocation3], 128  }
 0x2a4   :  { %857 = vsyncadd [#allocation3], 4294967168 }
 0x2a5   :  { %671 = vsyncpa [#allocation3], 1 }

</bundles_post_ra>
